<compile_context>
chip_gen: v6e
topology: v6e:2x2x1
jax: 0.10.0
libtpu: 0.0.40
codegen_flags: <defaults>
</compile_context>

<pallas_src>
import math
import jax
import jax.numpy as jnp
from jax.experimental import pallas as pl
from jax.experimental.pallas import tpu as pltpu


def _round_up(x, m):
    return (x + m - 1) // m * m


def _embeddings_kernel(x_ref, w_ref, posb_ref, o_ref):
    # x_ref   : (TM, E)   flattened (batch*seq) token-feature rows
    # w_ref   : (E, Hp)   word-embedding Linear weight, transposed, lane-padded to Hp%128==0
    # posb_ref: (TM, Hp)  position embeddings with the Linear bias folded in, lane-padded
    # o_ref   : (TM, Hp)  lane-dense output slab (unmasked full-lane stores)
    tok = jnp.dot(x_ref[...], w_ref[...], preferred_element_type=jnp.float32)  # MXU
    o_ref[...] = (tok + posb_ref[...]).astype(o_ref.dtype)
    # TODO(synk): training-mode dropout (inverted, p=dropout_prob) omitted; eval-mode
    # forward is the identity. Training parity would use pltpu.prng_seed +
    # pltpu.prng_random_bits to build the keep-mask and scale by 1/(1-p).


def embeddings_forward(input_ids, w_word, b_word, pos_emb_table,
                       *, row_tile=None, use_bf16=False):
    """input_ids     : [B, S, E] float32
       w_word        : [H, E]   (PyTorch nn.Linear weight layout)
       b_word        : [H]
       pos_emb_table : [max_seq_len, H]
       returns       : [B, S, H] float32
    """
    B, S, E = input_ids.shape
    H = w_word.shape[0]
    N = B * S

    # Lane-dense output: round H up to a multiple of 128 (no-op when already aligned).
    Hp = _round_up(H, 128)

    # Row tile: single grid step at small N; cap the tile for large N so the
    # double-buffered (tm,E)/(tm,Hp) tiles + resident (E,Hp) weight stay well under
    # v7x's 64 MiB VMEM (v5e/v6e have 128 MiB).
    if row_tile is None:
        tm = N if N <= 1024 else 1024
    else:
        tm = row_tile
    sublane = 16 if use_bf16 else 8           # bf16 packs 2 rows/sublane
    tm = max(_round_up(tm, sublane), sublane)
    Np = _round_up(N, tm)

    # --- wrapper-side layout plumbing (done once per call, not per tile) ---
    x = input_ids.reshape(N, E)               # flatten batch*seq
    w_t = w_word.T                            # (E, H)

    # Fold the Linear bias into the position table, then tile over the batch.
    posb = (pos_emb_table[:S] + b_word[None, :]).astype(jnp.float32)  # (S, H)
    posb = jnp.tile(posb, (B, 1))                                     # (N, H)

    if Hp != H:                               # lane padding (zeros are sliced off below)
        w_t = jnp.pad(w_t, ((0, 0), (0, Hp - H)))
        posb = jnp.pad(posb, ((0, 0), (0, Hp - H)))
    if Np != N:                               # sublane/row padding
        x = jnp.pad(x, ((0, Np - N), (0, 0)))
        posb = jnp.pad(posb, ((0, Np - N), (0, 0)))

    if use_bf16:                              # v6e/v7x: full-rate MXU, half the input DMA
        x = x.astype(jnp.bfloat16)
        w_t = w_t.astype(jnp.bfloat16)

    grid = (Np // tm,)
    out = pl.pallas_call(
        _embeddings_kernel,
        out_shape=jax.ShapeDtypeStruct((Np, Hp), jnp.float32),
        grid=grid,
        in_specs=[
            pl.BlockSpec((tm, E), lambda i: (i, 0)),    # row tile of flattened input
            pl.BlockSpec((E, Hp), lambda i: (0, 0)),    # weight resident across steps
            pl.BlockSpec((tm, Hp), lambda i: (i, 0)),   # pos(+bias) tile
        ],
        out_specs=pl.BlockSpec((tm, Hp), lambda i: (i, 0)),
        compiler_params=pltpu.CompilerParams(
            dimension_semantics=("parallel",)),         # independent row steps (v7x 2-TC)
    )(x, w_t, posb)

    # Undo the layout plumbing: slice off padding (no-op when H%128==0 and N%tm==0)
    # and restore the (B, S, H) view of the contiguous buffer.
    return out[:N, :H].reshape(B, S, H)


def reference_forward(input_ids, w_word, b_word, pos_emb_table):
    B, S, E = input_ids.shape
    tok = jnp.einsum("bse,he->bsh", input_ids, w_word) + b_word
    pos = pos_emb_table[:S][None, :, :]
    return tok + pos


if __name__ == "__main__":
    # config: embedding_dim=32, transformer_hidden_dim=64, max_seq_len=16, dropout_prob=0.1
    B, S, E, H, MAX_SEQ = 2, 8, 32, 64, 16

    key = jax.random.PRNGKey(0)
    k_x, k_w, k_b, k_p = jax.random.split(key, 4)

    input_ids = jax.random.normal(k_x, (B, S, E), dtype=jnp.float32)
    # nn.Linear weight init: normal(std=0.02) (as in the module's __init__)
    w_word = 0.02 * jax.random.normal(k_w, (H, E), dtype=jnp.float32)
    # nn.Linear bias default init: uniform(-1/sqrt(E), 1/sqrt(E))
    bound = 1.0 / math.sqrt(E)
    b_word = jax.random.uniform(k_b, (H,), minval=-bound, maxval=bound, dtype=jnp.float32)
    # nn.Embedding weight: normal(std=0.02)
    pos_emb_table = 0.02 * jax.random.normal(k_p, (MAX_SEQ, H), dtype=jnp.float32)

    out = embeddings_forward(input_ids, w_word, b_word, pos_emb_table)
    out = jax.block_until_ready(out)

    ref = reference_forward(input_ids, w_word, b_word, pos_emb_table)
    assert out.shape == (B, S, H)
    assert jnp.allclose(out, ref, atol=1e-5, rtol=1e-5), "mismatch vs reference"

    print("KERNEL_OK")
</pallas_src>

<mosaic_0001>
module attributes {stable_mosaic.version = 11 : i64} {
  func.func @_embeddings_kernel(%arg0: i32, %arg1: memref<16x32xf32, #tpu.memory_space<vmem>>, %arg2: memref<32x128xf32, #tpu.memory_space<vmem>>, %arg3: memref<16x128xf32, #tpu.memory_space<vmem>>, %arg4: memref<16x128xf32, #tpu.memory_space<vmem>>) attributes {dimension_semantics = [#tpu.dimension_semantics<parallel>], iteration_bounds = array<i64: 1>, scalar_prefetch = 0 : i64, scratch_operands = 0 : i64, tpu.core_type = #tpu.core_type<tc>, window_params = [{transform_indices = @transform_0, window_bounds = array<i64: 16, 32>}, {pipeline_mode = #tpu.pipeline_mode<synchronous>, transform_indices = @transform_1, window_bounds = array<i64: 32, 128>}, {transform_indices = @transform_2, window_bounds = array<i64: 16, 128>}, {transform_indices = @transform_3, window_bounds = array<i64: 16, 128>}]} {
    %c0 = arith.constant 0 : index
    %c0_0 = arith.constant 0 : index
    %0 = vector.load %arg1[%c0, %c0_0] : memref<16x32xf32, #tpu.memory_space<vmem>>, vector<16x32xf32>
    %c0_1 = arith.constant 0 : index
    %c0_2 = arith.constant 0 : index
    %1 = vector.load %arg2[%c0_1, %c0_2] : memref<32x128xf32, #tpu.memory_space<vmem>>, vector<32x128xf32>
    %cst = arith.constant dense<0.000000e+00> : vector<16x128xf32>
    %2 = tpu.matmul %0, %1, %cst {dimension_numbers = #tpu.dot_dimension_numbers<[1], [0], [0], [1], [0, 0, 1, 1], [], []>} : vector<16x32xf32>, vector<32x128xf32>, vector<16x128xf32> -> vector<16x128xf32>
    %c0_3 = arith.constant 0 : index
    %c0_4 = arith.constant 0 : index
    %3 = vector.load %arg3[%c0_3, %c0_4] : memref<16x128xf32, #tpu.memory_space<vmem>>, vector<16x128xf32>
    %4 = arith.addf %2, %3 : vector<16x128xf32>
    %c0_5 = arith.constant 0 : index
    %c0_6 = arith.constant 0 : index
    %5 = vector.load %arg4[%c0_5, %c0_6] : memref<16x128xf32, #tpu.memory_space<vmem>>, vector<16x128xf32>
    tpu.vector_store %arg4[%c0_5, %c0_6], %4 {strides = array<i32>} : memref<16x128xf32, #tpu.memory_space<vmem>>, vector<16x128xf32>,
    return
  }
  func.func @transform_0(%arg0: i32) -> (i32, i32) {
    %c0_i32 = arith.constant 0 : i32
    %c0_i32_0 = arith.constant 0 : i32
    return %arg0, %c0_i32 : i32, i32
  }
  func.func @transform_1(%arg0: i32) -> (i32, i32) {
    %c0_i32 = arith.constant 0 : i32
    %c0_i32_0 = arith.constant 0 : i32
    %c0_i32_1 = arith.constant 0 : i32
    return %c0_i32, %c0_i32_0 : i32, i32
  }
  func.func @transform_2(%arg0: i32) -> (i32, i32) {
    %c0_i32 = arith.constant 0 : i32
    %c0_i32_0 = arith.constant 0 : i32
    return %arg0, %c0_i32 : i32, i32
  }
  func.func @transform_3(%arg0: i32) -> (i32, i32) {
    %c0_i32 = arith.constant 0 : i32
    %c0_i32_0 = arith.constant 0 : i32
    return %arg0, %c0_i32 : i32, i32
  }
}

</mosaic_0001>

<bundles_post_ra>
// kernel: tpu_custom_call.1
= control target key start
LH: loop header
LB: loop body
LE: loop exit
PB: predicated region body
PF: predicated region fallthrough
CT: control target
= control target key end

     0   :  { %8 = vsyncpa [#allocation3], 0  ;;  %s329_s0 = inlined_call_operand.hbm [shape: f32[16,32], index: 0, kind: input, shape index: {}]   ;;  %s330_s1 = inlined_call_operand.hbm [shape: f32[32,128], index: 1, kind: input, shape index: {}]   ;;  %s331_s2 = inlined_call_operand.hbm [shape: f32[16,128], index: 2, kind: input, shape index: {}]   ;;  %s332_s3 = inlined_call_operand.hbm [shape: f32[16,128], index: 3, kind: output, shape index: {}]  }
   0x1   :  { %9 = vsyncpa [#allocation6], 0 }
   0x2   :  { %10 = vsyncpa [#allocation4], 0  ;;  %s277_s12 = smov [#allocation5]   ;;  %s278_s14 = smov [#allocation2]  }
   0x3   :  { %s28_s13 = sshll.u32 %s277_s12, 4  ;;  %s16_s15 = sshll.u32 %s278_s14, 4  ;;  %s29_s13 = int_to_ptr.vmem [resolvable:$true] %s28_s13  ;;  %s17_s15 = int_to_ptr.vmem [resolvable:$true] %s16_s15 }
   0x4   :  { %s199_s16 = scalar_lea.vmem %s29_s13, 512  ;;  %p204_p1 = scmp.lt.s32.totalorder %s29_s13, %s29_s13 }
   0x5   :  { %p200_p0 = scmp.ne.s32.totalorder %s29_s13, %s199_s16  ;;  %p205_p2 = scmp.lt.s32.totalorder %s199_s16, %s199_s16 }
   0x7   :  { %p206_p3 = por %p205_p2, %p204_p1 }
   0x9   :  { %p207_p4 = pnand %p206_p3, %p200_p0 }
   0xb   :  { %210 = shalt.err (!%p207_p4)
}
   0xc   :  { %s279_s17 = smov 128   ;;  %s280_s18 = smov 8  }
   0xd   :  { %34 = dma.hbm_to_vmem [thread:$0]  %s330_s1, 512, %s29_s13, [#allocation6], %s279_s17, %s279_s17, %s280_s18  }
   0xe   :  { %s219_s21 = scalar_lea.vmem %s17_s15, 256  ;;  %p224_p6 = scmp.lt.s32.totalorder %s17_s15, %s17_s15 }
   0xf   :  { %p220_p5 = scmp.ne.s32.totalorder %s17_s15, %s219_s21  ;;  %p225_p7 = scmp.lt.s32.totalorder %s219_s21, %s219_s21 }
  0x11   :  { %p226_p8 = por %p225_p7, %p224_p6 }
  0x13   :  { %p227_p9 = pnand %p226_p8, %p220_p5 }
  0x15   :  { %230 = shalt.err (!%p227_p9)
}
  0x16   :  { %22 = dma.hbm_to_vmem [thread:$0]  %s329_s0, 256, %s17_s15, [#allocation3], %s279_s17, %s279_s17, %s280_s18  }
  0x17   :  { %s281_s24 = smov [#allocation7]  }
  0x18   :  { %s40_s25 = sshll.u32 %s281_s24, 4  ;;  %s41_s25 = int_to_ptr.vmem [resolvable:$true] %s40_s25 }
  0x19   :  { %s239_s26 = scalar_lea.vmem %s41_s25, 256  ;;  %p244_p11 = scmp.lt.s32.totalorder %s41_s25, %s41_s25 }
  0x1a   :  { %p240_p10 = scmp.ne.s32.totalorder %s41_s25, %s239_s26  ;;  %p245_p12 = scmp.lt.s32.totalorder %s239_s26, %s239_s26 }
  0x1c   :  { %p246_p13 = por %p245_p12, %p244_p11 }
  0x1e   :  { %p247_p0 = pnand %p246_p13, %p240_p10 }
  0x20   :  { %250 = shalt.err (!%p247_p0)
}
  0x21   :  { %46 = dma.hbm_to_vmem [thread:$0]  %s331_s2, 256, %s41_s25, [#allocation6], %s279_s17, %s279_s17, %s280_s18  }
  0x22   :  { %271 = dma.done.wait [#allocation3], 256  }
  0x23   :  { %272 = vsyncadd [#allocation3], 4294967040 }
  0x24   :  { %273 = dma.done.wait [#allocation6], 768  }
  0x25   :  { %274 = vsyncadd [#allocation6], 4294966528  ;;  %vm64_vm0 = vcmask 261120   ;;  %v61_v0 = vld [vmem:[#allocation5 + $0x18] sm:$0xff]  ;;  %v60_v1 = vld [vmem:[#allocation5 + $0x10] sm:$0xff]  ;;  %s282_s0 = smov [#allocation8]  }
  0x26   :  { %174 = vmatprep.subr.mxu0 %v61_v0  ;;  %v56_v2 = vld [vmem:[#allocation2] sm:$0xff]  ;;  %v59_v3 = vld [vmem:[#allocation5 + $0x8] sm:$0xff]  ;;  %v58_v4 = vld [vmem:[#allocation5] sm:$0xff]  ;;  %s153_s2 = sshll.u32 %s282_s0, 4  ;;  %s154_s2 = int_to_ptr.vmem [resolvable:$true] %s153_s2 }
  0x27   :  { %175 = vmatpush3.msra.mxu0 %v61_v0  ;;  %182 = vmatprep.mubr.msk.f32.mxu0 %vm64_vm0, %v56_v2  ;;  %v57_v5 = vld [vmem:[#allocation2 + $0x8] sm:$0xff]  ;;  %v63_v6 = vld [vmem:[#allocation7 + $0x8] sm:$0xff]  ;;  %v62_v8 = vld [vmem:[#allocation7] sm:$0xff]  ;;  %s251_s28 = scalar_lea.vmem %s154_s2, 256  ;;  %p256_p2 = scmp.lt.s32.totalorder %s154_s2, %s154_s2 }
  0x28   :  { %176 = vmatprep.subr.mxu0 %v60_v1  ;;  %p252_p1 = scmp.ne.s32.totalorder %s154_s2, %s251_s28  ;;  %p257_p3 = scmp.lt.s32.totalorder %s251_s28, %s251_s28 }
  0x29   :  { %177 = vmatpush3.msra.mxu0 %v60_v1 }
  0x2a   :  { %178 = vmatprep.subr.mxu0 %v59_v3  ;;  %p258_p4 = por %p257_p3, %p256_p2 }
  0x2b   :  { %179 = vmatpush3.msra.mxu0 %v59_v3 }
  0x2c   :  { %180 = vmatprep.subr.mxu0 %v58_v4  ;;  %p259_p5 = pnand %p258_p4, %p252_p1 }
  0x2d   :  { %181 = vmatpush3.msra.mxu0 %v58_v4 }
  0x2e   :  { %183 = vmatmul.mubr.msk.f32.vlgmr.msra.gmra.mxu0 %vm64_vm0, %v57_v5 }
  0xee   :  { %v184_v7 = vpop.f32.mrf.mxu0 }
  0xef   :  { %v143_v9 = vadd.f32 %v184_v7, %v63_v6 }
  0xf0   :  { %v137_v10 = vpop.f32.mrf.mxu0 }
  0xf1   :  { %147 = vst [vmem:[#allocation8 + $0x8] sm:$0xff] %v143_v9  ;;  %v138_v11 = vadd.f32 %v137_v10, %v62_v8 }
  0xf3   :  { %146 = vst [vmem:[#allocation8] sm:$0xff] %v138_v11 }
  0xf4   :  { %262 = shalt.err (!%p259_p5)
}
  0xf5   :  { %159 = dma.vmem_to_hbm [thread:$0]  %s154_s2, 256, %s332_s3, [#allocation4], %s279_s17, %s279_s17, %s280_s18  }
  0xf6   :  { %275 = dma.done.wait [#allocation4], 256  }
  0xf7   :  { %276 = vsyncadd [#allocation4], 4294967040 }
  0xf8   :  { %163 = vsyncpa [#allocation3], 1 }
  0xf9   :  { %164 = vsyncpa [#allocation6], 1 }
  0xfa   :  { %165 = vsyncpa [#allocation4], 1 }

</bundles_post_ra>
